<compile_context>
chip_gen: v7x
topology: tpu7x:2x2x1
jax: 0.10.0
libtpu: 0.0.40
codegen_flags: <defaults>
</compile_context>

<pallas_src>
import jax
import jax.numpy as jnp
from jax.experimental import pallas as pl
from jax.experimental.pallas import tpu as pltpu


def _embed_kernel(p_ref, w_ref, a_ref, o_ref):
    # p_ref: (1, tn, K) bf16      w_ref: (K, D) bf16 (resident, constant index)
    # a_ref: (tn, D)  f32 (pos + conv bias; row 0 carries pos[0] + cls_token)
    # o_ref: (1, tn, D) f32 — aligned per-tile block, written exactly once.
    acc = jnp.dot(p_ref[0], w_ref[...], preferred_element_type=jnp.float32)
    o_ref[0] = (acc + a_ref[...]).astype(o_ref.dtype)


def _pick_tile(rows, K, D, budget_bytes=24 * 1024 * 1024):
    """Largest row-tile (multiple of 8, <= rows) whose buffers fit the budget."""
    def need(tn):
        return (2 * tn * K * 2        # double-buffered patch tiles (bf16)
                + 2 * K * D * 2       # weight (bf16)
                + 2 * tn * D * 4      # fused-add tiles (f32)
                + 2 * tn * D * 4)     # output tiles (f32)
    if rows <= 8:
        return rows, need(rows)       # whole dim as one (full-extent) block
    for cand in (1024, 512, 256, 128, 64, 32, 16, 8):
        if cand <= rows and need(cand) <= budget_bytes:
            return cand, need(cand)
    return 8, need(8)


def embed_layer_forward(x, conv_w, conv_b, cls_token, pos_embedding, patch_size):
    """x: (B, C, H, W) float32 NCHW.  Returns (B, N+1, D) float32 (cls row 0)."""
    B, C, H, W = x.shape
    P = patch_size
    D = conv_w.shape[0]
    Hp, Wp = H // P, W // P
    N = Hp * Wp
    K = C * P * P
    rows = N + 1

    # --- glue (plain JAX): unfold into patches, flatten order (c, ph, pw) ---
    patches = x.reshape(B, C, Hp, P, Wp, P)
    patches = patches.transpose(0, 2, 4, 1, 3, 5).reshape(B, N, K)
    # Prepend one all-zero "patch" row: zeros @ W == 0, so row 0 of the GEMM
    # output is exactly the fused (cls_token + pos[0]) add below.  This keeps
    # every output tile sublane-aligned (no +1-row offset anywhere).
    patches_p = jnp.concatenate(
        [jnp.zeros((B, 1, K), x.dtype), patches], axis=1).astype(jnp.bfloat16)

    # Flattened conv weight, bf16 for full-rate MXU (f32 accumulation below).
    w_mat = conv_w.reshape(D, K).T.astype(jnp.bfloat16)              # (K, D)

    # Fused additive term: row 0 = pos[0] + cls_token, rows 1.. = pos + bias.
    pos = pos_embedding.reshape(rows, D).astype(jnp.float32)
    add_rows = jnp.concatenate(
        [cls_token.reshape(1, D).astype(jnp.float32),
         jnp.broadcast_to(conv_b.reshape(1, D).astype(jnp.float32), (N, D))],
        axis=0)
    add_full = pos + add_rows                                        # (rows, D)

    tn, vmem_need = _pick_tile(rows, K, D)
    n_tiles = pl.cdiv(rows, tn)
    # Explicit scoped-VMEM budget: above v5e's 16 MiB default, safely inside
    # v7x's 64 MiB physical.
    vmem_limit = int(min(max(2 * vmem_need, 32 * 1024 * 1024),
                         48 * 1024 * 1024))

    out = pl.pallas_call(
        _embed_kernel,
        out_shape=jax.ShapeDtypeStruct((B, rows, D), jnp.float32),
        grid_spec=pltpu.PrefetchScalarGridSpec(
            num_scalar_prefetch=0,
            grid=(n_tiles, B),
            in_specs=[
                pl.BlockSpec((1, tn, K), lambda nt, b: (b, nt, 0)),   # patches
                pl.BlockSpec((K, D), lambda nt, b: (0, 0)),           # weight
                pl.BlockSpec((tn, D), lambda nt, b: (nt, 0)),         # pos+bias
            ],
            out_specs=pl.BlockSpec((1, tn, D), lambda nt, b: (b, nt, 0)),
        ),
        compiler_params=pltpu.CompilerParams(
            dimension_semantics=("parallel", "parallel"),
            vmem_limit_bytes=vmem_limit),
    )(patches_p, w_mat, add_full)
    return out


def _reference(x, conv_w, conv_b, cls_token, pos_embedding, patch_size):
    """Pure-JAX (f32) reference mirroring the PyTorch forward."""
    B = x.shape[0]
    D = conv_w.shape[0]
    y = jax.lax.conv_general_dilated(
        x, conv_w,
        window_strides=(patch_size, patch_size),
        padding="VALID",
        dimension_numbers=("NCHW", "OIHW", "NCHW"),
    ) + conv_b.reshape(1, D, 1, 1)
    y = y.reshape(B, D, -1).transpose(0, 2, 1)                # (B, N, D)
    cls = jnp.broadcast_to(cls_token, (B, 1, D))
    y = jnp.concatenate([cls, y], axis=1)
    return y + pos_embedding


if __name__ == "__main__":
    # Small config consistent with the module:
    # batch=2, n_channels=4, img_size=16, patch_size=4, embed_dim=32
    B, C, IMG, P, D = 2, 4, 16, 4, 32
    N = (IMG // P) ** 2

    key = jax.random.PRNGKey(0)
    k_x, k_w, k_b, k_cls, k_pos = jax.random.split(key, 5)

    x = jax.random.normal(k_x, (B, C, IMG, IMG), dtype=jnp.float32)
    conv_w = jax.random.normal(k_w, (D, C, P, P), dtype=jnp.float32) * 0.02
    conv_b = jax.random.normal(k_b, (D,), dtype=jnp.float32) * 0.02
    # (torch inits these to zeros; use deterministic small randoms so the
    #  cls-row / pos-add paths are actually exercised)
    cls_token = jax.random.normal(k_cls, (1, 1, D), dtype=jnp.float32) * 0.02
    pos_embedding = jax.random.normal(k_pos, (1, N + 1, D), dtype=jnp.float32) * 0.02

    out = embed_layer_forward(x, conv_w, conv_b, cls_token, pos_embedding, P)
    out = jax.block_until_ready(out)

    ref = _reference(x, conv_w, conv_b, cls_token, pos_embedding, P)
    assert out.shape == (B, N + 1, D), f"bad shape {out.shape}"
    # bf16 MXU operands with f32 accumulation: loosened tolerance.
    assert jnp.allclose(out, ref, atol=2e-2, rtol=2e-2), "mismatch vs reference"

    print("KERNEL_OK")
</pallas_src>

<mosaic_0001>
module attributes {stable_mosaic.version = 11 : i64} {
  func.func @_embed_kernel(%arg0: i32, %arg1: i32, %arg2: memref<1x16x64xbf16, #tpu.memory_space<vmem>>, %arg3: memref<64x32xbf16, #tpu.memory_space<vmem>>, %arg4: memref<16x32xf32, #tpu.memory_space<vmem>>, %arg5: memref<1x16x32xf32, #tpu.memory_space<vmem>>) attributes {dimension_semantics = [#tpu.dimension_semantics<parallel>, #tpu.dimension_semantics<parallel>], iteration_bounds = array<i64: 2, 2>, scalar_prefetch = 0 : i64, scratch_operands = 0 : i64, tpu.core_type = #tpu.core_type<tc>, window_params = [{transform_indices = @transform_0, window_bounds = array<i64: 1, 16, 64>}, {pipeline_mode = #tpu.pipeline_mode<synchronous>, transform_indices = @transform_1, window_bounds = array<i64: 64, 32>}, {transform_indices = @transform_2, window_bounds = array<i64: 16, 32>}, {transform_indices = @transform_3, window_bounds = array<i64: 1, 16, 32>}]} {
    %c0 = arith.constant 0 : index
    %c0_0 = arith.constant 0 : index
    %c0_1 = arith.constant 0 : index
    %0 = vector.load %arg2[%c0, %c0_0, %c0_1] : memref<1x16x64xbf16, #tpu.memory_space<vmem>>, vector<1x16x64xbf16>
    %1 = vector.shape_cast %0 : vector<1x16x64xbf16> to vector<16x64xbf16>
    %c0_2 = arith.constant 0 : index
    %c0_3 = arith.constant 0 : index
    %2 = vector.load %arg3[%c0_2, %c0_3] : memref<64x32xbf16, #tpu.memory_space<vmem>>, vector<64x32xbf16>
    %cst = arith.constant dense<0.000000e+00> : vector<16x32xf32>
    %3 = tpu.matmul %1, %2, %cst {dimension_numbers = #tpu.dot_dimension_numbers<[1], [0], [0], [1], [0, 0, 1, 1], [], []>} : vector<16x64xbf16>, vector<64x32xbf16>, vector<16x32xf32> -> vector<16x32xf32>
    %c0_4 = arith.constant 0 : index
    %c0_5 = arith.constant 0 : index
    %4 = vector.load %arg4[%c0_4, %c0_5] : memref<16x32xf32, #tpu.memory_space<vmem>>, vector<16x32xf32>
    %5 = arith.addf %3, %4 : vector<16x32xf32>
    %c0_6 = arith.constant 0 : index
    %c0_7 = arith.constant 0 : index
    %c0_8 = arith.constant 0 : index
    %6 = vector.load %arg5[%c0_6, %c0_7, %c0_8] : memref<1x16x32xf32, #tpu.memory_space<vmem>>, vector<1x16x32xf32>
    %7 = vector.shape_cast %6 : vector<1x16x32xf32> to vector<16x32xf32>
    %8 = vector.shape_cast %5 : vector<16x32xf32> to vector<1x16x32xf32>
    tpu.vector_store %arg5[%c0_6, %c0_7, %c0_8], %8 {strides = array<i32>} : memref<1x16x32xf32, #tpu.memory_space<vmem>>, vector<1x16x32xf32>,
    return
  }
  func.func @transform_0(%arg0: i32, %arg1: i32) -> (i32, i32, i32) {
    %c0_i32 = arith.constant 0 : i32
    %c0_i32_0 = arith.constant 0 : i32
    return %arg1, %arg0, %c0_i32 : i32, i32, i32
  }
  func.func @transform_1(%arg0: i32, %arg1: i32) -> (i32, i32) {
    %c0_i32 = arith.constant 0 : i32
    %c0_i32_0 = arith.constant 0 : i32
    %c0_i32_1 = arith.constant 0 : i32
    return %c0_i32, %c0_i32_0 : i32, i32
  }
  func.func @transform_2(%arg0: i32, %arg1: i32) -> (i32, i32) {
    %c0_i32 = arith.constant 0 : i32
    %c0_i32_0 = arith.constant 0 : i32
    return %arg0, %c0_i32 : i32, i32
  }
  func.func @transform_3(%arg0: i32, %arg1: i32) -> (i32, i32, i32) {
    %c0_i32 = arith.constant 0 : i32
    %c0_i32_0 = arith.constant 0 : i32
    return %arg1, %arg0, %c0_i32 : i32, i32, i32
  }
}

</mosaic_0001>

<bundles_post_ra>
// kernel: tpu_custom_call.1
= control target key start
LH: loop header
LB: loop body
LE: loop exit
PB: predicated region body
PF: predicated region fallthrough
CT: control target
= control target key end

     0   :  { %s928_s12 = smov 0   ;;  %s930_s13 = smov 0   ;;  %s1070_s0 = inlined_call_operand.vmem [shape: bf16[2,17,64], index: 0, kind: input, shape index: {}]   ;;  %s1071_s1 = inlined_call_operand.vmem [shape: bf16[64,32], index: 1, kind: input, shape index: {}]   ;;  %s1072_s2 = inlined_call_operand.vmem [shape: f32[17,32], index: 2, kind: input, shape index: {}]   ;;  %s1073_s3 = inlined_call_operand.vmem [shape: f32[2,17,32], index: 3, kind: output, shape index: {}]  }
   0x1   :  { %s932_s14 = smov 0   ;;  %s934_s15 = smov 0  }
   0x2   :  { %s936_s16 = smov 0   ;;  %s938_s17 = smov 0  }
   0x3   :  { %s940_s18 = smov 0  }
   0x4 LB: > { %s22_s19 = sadd.s32 1, %s864_s16  ;;  %s25_s20 = sadd.s32 1, %s868_s17  ;;  %s872_s18 = sphi %s940_s18, %s13_s18   ;;  %s868_s17 = sphi %s938_s17, %s1080_s17   ;;  %s864_s16 = sphi %s936_s16, %s1079_s16   ;;  %s860_s15 = sphi %s934_s15, %s1078_s15   ;;  %s856_s14 = sphi %s932_s14, %s1077_s14   ;;  %s852_s13 = sphi %s930_s13, %s1076_s13   ;;  %s848_s12 = sphi %s928_s12, %s1075_s12  }
   0x5   : > { %p23_p0 = scmp.ge.s32.totalorder %s22_s19, 2  ;;  %s605_s21 = sadd.s32 4294967295, %s872_s18  }
   0x6   : > { %p119_p1 = scmp.ne.s32.totalorder %s852_s13, %s848_s12  ;;  %p120_p2 = scmp.eq.s32.totalorder %s605_s21, 3 }
   0x7   : > { %s1082_s19 = smov (%p23_p0, %s22_s19), 0  ;;  %s1084_s20 = smov (!%p23_p0, %s25_s20), %s868_s17 }
   0x8   : > { %s104_s22 = ssub.s32 %s864_s16, %s1082_s19  ;;  %p27_p3 = scmp.ge.s32.totalorder %s1084_s20, 2 }
   0x9   : > { %p609_p4 = scmp.ge.s32.totalorder %s872_s18, 1  ;;  %p974_p5 = por %p120_p2, %p119_p1 }
   0xa   : > { %p185_p6 = scmp.lt.s32.totalorder %s872_s18, 5  ;;  %s1086_s20 = smov (%p27_p3, %s1084_s20), 0 }
   0xb   : > { %s105_s24 = ssub.s32 %s868_s17, %s1086_s20  ;;  %s109_s26 = sadd.s32 1, %s852_s13 }
   0xc   : > { %p186_p7 = pnand %p609_p4, %p185_p6  ;;  %s106_s25 = sor.u32 %s105_s24, %s104_s22 }
   0xd   : > { %p107_p8 = scmp.eq.s32.totalorder %s106_s25, 0  ;;  %v781_v0 = vld [vmem:[%s1071_s1] sm:$0xff] (!%p186_p7)   ;;  %v906_v1 = vmov (!%p186_p7), 0.0   ;;  %v782_v2 = vld [vmem:[%s1071_s1 + $0x8] sm:$0xff] (!%p186_p7)   ;;  %vm907_vm0 = vmmov (!%p186_p7), 0   ;;  %s994_s5 = sshll.u32 (!%p186_p7), %s860_s15, 1 }
   0xe   : > { %189 = sbr.rel (%p186_p7) target bundleno = 297 (0x129), region = 32  ;;  %645 = vmatprep.subr.bf16.mxu0 (!%p186_p7), %v906_v1  ;;  %653 = vmatprep.mubr.msk.bf16.mxu0 (!%p186_p7), %vm907_vm0, %v906_v1  ;;  %p230_p9 = scmp.lt.s32.totalorder (!%p186_p7), %s856_s14, 1  ;;  %v783_v3 = vld [vmem:[%s1071_s1 + $0x10] sm:$0xff] (!%p186_p7)   ;;  %v784_v4 = vld [vmem:[%s1071_s1 + $0x18] sm:$0xff] (!%p186_p7)   ;;  %vm304_vm1 = vcmask (!%p186_p7), 523264   ;;  %vm349_vm2 = vcmask (!%p186_p7), 261120  }
   0xf   : > { %s985_s27 = scalar_select %p107_p8, %s852_s13, %s109_s26  }
  0x10   : > { %646 = vmatpush3.bf16.msra.mxu0 (!%p186_p7), %v781_v0  ;;  %p232_p10 = scmp.lt.s32.totalorder (!%p186_p7), %s994_s5, 2  ;;  %s222_s29 = sand.u32 (!%p186_p7), 1, %s848_s12  }
  0x11   : > { %647 = vmatprep.subr.bf16.mxu0 (!%p186_p7), %v906_v1  ;;  %s610_s7 = sshll.u32 (!%p186_p7), %s222_s29, 4 }
  0x12   : > { %s1013_s8 = scalar_lea.vmem (!%p186_p7), [#allocation2], %s610_s7  }
  0x14   : > { %648 = vmatpush3.bf16.msra.mxu0 (!%p186_p7), %v782_v2 }
  0x15   : > { %s231_s6 = scalar_select %p230_p9, %s856_s14, 1  ;;  %649 = vmatprep.subr.bf16.mxu0 %v906_v1 }
  0x16   : > { %s233_s9 = scalar_select %p232_p10, %s994_s5, 2 }
  0x17   : > { %s657_s10 = smul.u32 3, %s231_s6  ;;  %s360_s12 = ssub.s32 (%p974_p5), 3, %s994_s5 }
  0x18   : > { %650 = vmatpush3.bf16.msra.mxu0 %v783_v3  ;;  %s614_s28 = sshll.u32 %s233_s9, 3  ;;  %p361_p11 = scmp.lt.s32.totalorder (%p974_p5), %s360_s12, 2 }
  0x19   : > { %s235_s11 = sadd.s32 %s657_s10, %s233_s9  ;;  %651 = vmatprep.subr.bf16.mxu0 %v906_v1  ;;  %s251_s6 = scalar_lea.vmem %s1072_s2, %s614_s28 }
  0x1a   : > { %s612_s22 = sshll.u32 %s235_s11, 2  ;;  %v273_v6 = vld [vmem:[%s251_s6] sm:$0xff]  ;;  %v274_v8 = vld [vmem:[%s251_s6 + $0x8] sm:$0xff]  ;;  %s658_s9 = smul.u32 (%p974_p5), 3, %s856_s14 }
  0x1b   : > { %s237_s26 = scalar_lea.vmem %s1070_s0, %s612_s22 }
  0x1c   : > { %v785_v5 = vld [vmem:[%s237_s26] sm:$0xff]   ;;  %652 = vmatpush3.bf16.msra.mxu0 %v784_v4  ;;  %s366_s10 = sadd.s32 (%p974_p5), %s658_s9, %s994_s5 }
  0x1d   : > { %s625_s11 = sshll.u32 (%p974_p5), %s366_s10, 3 }
  0x1e   : > { %s1028_s24 = scalar_lea.vmem (%p974_p5), %s1073_s3, %s625_s11  }
  0x1f   : > { %654 = vmatmul.mubr.msk.bf16.vlgmr.msra.gmra.mrb[0].mxu0 %vm304_vm1, %v785_v5 }
  0xf1   : > { %358 = sbr.rel (!%p974_p5) target bundleno = 297 (0x129), region = 36 }
  0xf2   : > { %v342_v7 = vpop.f32.mrb[0].mxu0 }
  0xf3   : > { %v343_v9 = vadd.f32 %v342_v7, %v273_v6  ;;  %v655_v10 = vpop.f32.mrb[1].mxu0 }
  0xf4   : > { %v345_v11 = vpop.f32.mrb[2].mxu0 }
  0xf5   : > { %350 = vst.msk [vmem:[%s1013_s8] sm:$0xff] %vm349_vm2, %v343_v9  ;;  %v346_v12 = vadd.f32 %v345_v11, %v274_v8  ;;  %v656_v13 = vpop.f32.mrb[3].mxu0 }
  0xf7   : > { %351 = vst.msk [vmem:[%s1013_s8 + $0x8] sm:$0xff] %vm349_vm2, %v346_v12 }
  0xf8   : > { %s1088_s12 = smov (!%p361_p11, %s360_s12), 2 }
  0xf9   : > { %s623_s21 = sshll.u32 %s1088_s12, 7 }
  0xfa   : > { %p626_p12 = scmp.eq.s32.totalorder %s623_s21, 0 }
  0xfb   : > { %s1031_s23 = sshrl.u32 (!%p626_p12), %s1088_s12, 1 }
  0xfc   : > { %371 = sbr.rel (%p626_p12) target bundleno = 297 (0x129), region = 40  ;;  %p627_p13 = scmp.le.s32.totalorder (!%p626_p12), %s1031_s23, 0 }
 0x103   : > { %544 = sbr.rel (%p627_p13) target bundleno = 276 (0x114), region = 119  ;;  %s874_s14 = smov (!%p627_p13), %s1028_s24  }
 0x104   : > { %s878_s5 = smov (!%p627_p13), %s1013_s8   ;;  %s882_s25 = smov (!%p627_p13), 0  }
 0x105   : > { %s886_s26 = smov (!%p627_p13), 0  }
 0x10a LB: >> { %v435_v14 = vld [vmem:[%s880_s5] sm:$0xff]  ;;  %v437_v15 = vld [vmem:[%s880_s5 + $0x8] sm:$0xff]  ;;  %s439_s28 = sadd.s32 1, %s884_s25  ;;  %s429_s26 = sadd.s32 1, %s888_s26   ;;  %s888_s26 = sphi %s886_s26, %s429_s26   ;;  %s884_s25 = sphi %s882_s25, %s883_s25   ;;  %s880_s5 = sphi %s878_s5, %s444_s5   ;;  %s876_s14 = sphi %s874_s14, %s445_s14  }
 0x10b   : >> { %436 = vst [vmem:[%s876_s14] sm:$0xff] %v435_v14  ;;  %438 = vst [vmem:[%s876_s14 + $0x8] sm:$0xff] %v437_v15  ;;  %p440_p0 = scmp.ge.s32.totalorder %s439_s28, %s1031_s23  ;;  %p428_p1 = scmp.ge.s32.totalorder %s429_s26, %s1031_s23 }
 0x10d   : >> { %s1090_s28 = smov (%p440_p0, %s439_s28), 0  ;;  %431 = sbr.rel (!%p428_p1) target bundleno = 266 (0x10a), region = 125 }
 0x10e   : >> { %s628_s29 = sshll.u32 %s1090_s28, 4  ;;  %s883_s25 = smov %s1090_s28  }
 0x10f   : >> { %s444_s5 = scalar_lea.vmem %s1013_s8, %s628_s29 [#allocation2]   ;;  %s445_s14 = scalar_lea.vmem %s1028_s24, %s628_s29  }
 0x114 PF: > { %s1041_s30 = sand.u32 1, %s1088_s12   ;;  %s638_s4 = sshll.u32 %s1031_s23, 4 }
 0x115   : > { %s450_s6 = scalar_lea.vmem %s1013_s8, %s638_s4 [#allocation2]   ;;  %s452_s7 = scalar_lea.vmem %s1028_s24, %s638_s4  }
 0x116   : > { %p633_p2 = scmp.le.s32.totalorder %s1041_s30, 0 }
 0x117   : > { %s890_s9 = smov (!%p633_p2), %s452_s7   ;;  %s894_s10 = smov (!%p633_p2), %s450_s6  }
 0x118   : > { %558 = sbr.rel (%p633_p2) target bundleno = 297 (0x129), region = 130  ;;  %s898_s11 = smov (!%p633_p2), 0  }
 0x119   : > { %s902_s21 = smov (!%p633_p2), 0  }
 0x11f LB: >> { %v462_v16 = vld [vmem:[%s896_s10] sm:$0xff]  ;;  %s464_s12 = sadd.s32 1, %s900_s11  ;;  %s456_s21 = sadd.s32 1, %s904_s21   ;;  %s904_s21 = sphi %s902_s21, %s456_s21   ;;  %s900_s11 = sphi %s898_s11, %s899_s11   ;;  %s896_s10 = sphi %s894_s10, %s469_s10   ;;  %s892_s9 = sphi %s890_s9, %s470_s9  }
 0x120   : >> { %463 = vst [vmem:[%s892_s9] sm:$0xff] %v462_v16  ;;  %p465_p3 = scmp.ge.s32.totalorder %s464_s12, %s1041_s30  ;;  %p455_p4 = scmp.ge.s32.totalorder %s456_s21, %s1041_s30 }
 0x122   : >> { %s1092_s12 = smov (%p465_p3, %s464_s12), 0  ;;  %458 = sbr.rel (!%p455_p4) target bundleno = 287 (0x11f), region = 136 }
 0x123   : >> { %s634_s8 = sshll.u32 %s1092_s12, 3  ;;  %s899_s11 = smov %s1092_s12  }
 0x124   : >> { %s469_s10 = scalar_lea.vmem %s450_s6, %s634_s8 [#allocation2]   ;;  %s470_s9 = scalar_lea.vmem %s452_s7, %s634_s8  }
 0x129 PF: > { %s13_s18 = sadd.s32 1, %s872_s18   ;;  %s1075_s12 = smov %s852_s13 }
 0x12a   : > { %p10_p5 = scmp.ge.s32.totalorder %s13_s18, 6   ;;  %s1076_s13 = smov %s985_s27 }
 0x12b   : > { %s1077_s14 = smov %s864_s16  ;;  %s1078_s15 = smov %s868_s17 }
 0x12c   : > { %s1079_s16 = smov %s1082_s19  ;;  %s1080_s17 = smov %s1086_s20 }
 0x12d   :  { %12 = sbr.rel (!%p10_p5) target bundleno = 4 (0x4), region = 147 }

</bundles_post_ra>
